<compile_context>
chip_gen: v6e
topology: v6e:2x2x1
jax: 0.10.0
libtpu: 0.0.40
codegen_flags: <defaults>
</compile_context>

<pallas_src>
import functools

import jax
import jax.numpy as jnp
from jax import lax
from jax.experimental import pallas as pl
from jax.experimental.pallas import tpu as pltpu

_LANE = 128
_TARGET_INPUT_BLOCK_BYTES = 4 << 20        # ~4 MiB per input per grid step


def _sublane_for(*dtypes):
    """Sublane count per group so the block is layout-native for all operands."""
    smallest = min(jnp.dtype(d).itemsize for d in dtypes)
    return {1: 32, 2: 16}.get(smallest, 8)


def _focal_partial_kernel(x_ref, t_ref, out_ref, *, alpha, gamma,
                          valid_groups, groups_per_block, num_blocks):
    p = x_ref[...].astype(jnp.float32)      # (G, SUB, 128) probabilities
    t = t_ref[...]                          # native dtype; float value unused

    is_pos = t if t.dtype == jnp.bool_ else (t == 1)

    # Hard-binary fast path: pt == exp(-BCE) == p if t==1 else 1-p.
    # TODO(synk): soft (non-{0,1}) targets would need the two-log BCE + exp
    # form to match F.binary_cross_entropy exactly.
    pt = jnp.where(is_pos, p, 1.0 - p)
    # F.binary_cross_entropy clamps the log term at -100.
    bce = -jnp.maximum(jnp.log(pt), -100.0)

    alpha_t = jnp.where(is_pos, jnp.float32(alpha), jnp.float32(1.0 - alpha))

    one_minus_pt = 1.0 - pt
    g = float(gamma)
    if g == 2.0:
        mod = one_minus_pt * one_minus_pt          # VPU multiply, no EUP pow
    elif g.is_integer():
        mod = one_minus_pt ** int(g)               # integer_pow -> multiplies
    else:
        mod = one_minus_pt ** g                    # rare: float-exponent pow

    focal = alpha_t * mod * bce

    tail_groups = valid_groups - (num_blocks - 1) * groups_per_block
    if tail_groups == groups_per_block:
        # Evenly divided grid: no masking anywhere (trace-time skip).
        out_ref[...] = jnp.sum(focal, axis=0, keepdims=True)   # (1, SUB, 128)
    else:
        # Only the last grid block can contain out-of-range (garbage) groups.
        i = pl.program_id(0)

        @pl.when(i < num_blocks - 1)
        def _():
            out_ref[...] = jnp.sum(focal, axis=0, keepdims=True)

        @pl.when(i == num_blocks - 1)
        def _():
            grp = lax.broadcasted_iota(jnp.int32, (focal.shape[0], 1, 1), 0)
            masked = jnp.where(grp < tail_groups, focal, 0.0)
            out_ref[...] = jnp.sum(masked, axis=0, keepdims=True)


def weighted_focal_loss(inputs, targets, *, alpha=0.25, gamma=2.0,
                        reduction="mean"):
    """Matches WeightedFocalLoss.forward for reduction in {'mean', 'sum'}."""
    if reduction not in ("mean", "sum"):
        # TODO(synk): reduction='none' (elementwise output) not wired up here.
        raise NotImplementedError("only 'mean' and 'sum' reductions supported")

    x = inputs.reshape(-1)                 # native dtype, free reshape
    t = targets.reshape(-1)
    if t.dtype == jnp.bool_:
        t = t.astype(jnp.int8)             # 1 byte -> 1 byte; kernel compares natively

    sub = _sublane_for(x.dtype, t.dtype)
    group = sub * _LANE                    # elements per (SUB, 128) vreg group
    n = x.shape[0]
    g8 = pl.cdiv(n, group)                 # number of groups
    n_pad = g8 * group
    pad = n_pad - n
    if pad:
        # Zero pad (p=0, t=0 -> exactly 0 contribution); no-op when aligned.
        # TODO(synk): ragged inputs still take this one pad copy; a 1D-block
        # element-masked tail path would avoid it at the cost of layout risk.
        x = jnp.pad(x, (0, pad))
        t = jnp.pad(t, (0, pad))

    x3 = x.reshape(g8, sub, _LANE)
    t3 = t.reshape(g8, sub, _LANE)

    # Block sizing: ~4 MiB for the widest input per grid step.
    max_item = max(x3.dtype.itemsize, t3.dtype.itemsize)
    rows_per_block = max(_TARGET_INPUT_BLOCK_BYTES // (_LANE * max_item), sub)
    gpb = max(min(rows_per_block // sub, g8), 1)     # groups per grid step
    num_blocks = pl.cdiv(g8, gpb)

    kernel = functools.partial(
        _focal_partial_kernel,
        alpha=float(alpha),
        gamma=float(gamma),
        valid_groups=g8,
        groups_per_block=gpb,
        num_blocks=num_blocks,
    )

    x_blk = gpb * sub * _LANE * x3.dtype.itemsize
    t_blk = gpb * sub * _LANE * t3.dtype.itemsize
    o_blk = sub * _LANE * 4
    # 2 pipeline buffers per operand + headroom; explicit so the v5e 16 MiB
    # scoped default never gates the block size.
    vmem_limit = min(max(2 * (x_blk + t_blk + o_blk) + (4 << 20), 16 << 20),
                     48 << 20)

    cost = pl.CostEstimate(
        flops=12 * n_pad,
        transcendentals=n_pad,
        bytes_accessed=x3.size * x3.dtype.itemsize
        + t3.size * t3.dtype.itemsize + num_blocks * o_blk,
    )

    partials = pl.pallas_call(
        kernel,
        out_shape=jax.ShapeDtypeStruct((num_blocks, sub, _LANE), jnp.float32),
        grid_spec=pltpu.PrefetchScalarGridSpec(
            num_scalar_prefetch=0,
            grid=(num_blocks,),
            in_specs=[
                pl.BlockSpec((gpb, sub, _LANE), lambda i: (i, 0, 0)),
                pl.BlockSpec((gpb, sub, _LANE), lambda i: (i, 0, 0)),
            ],
            out_specs=pl.BlockSpec((1, sub, _LANE), lambda i: (i, 0, 0)),
        ),
        compiler_params=pltpu.CompilerParams(
            dimension_semantics=("parallel",),
            vmem_limit_bytes=int(vmem_limit)),
        cost_estimate=cost,
    )(x3, t3)

    total = jnp.sum(partials)              # tiny final reduce in XLA
    if reduction == "mean":
        total = total / jnp.float32(n)
    return total


def _reference(inputs, targets, alpha=0.25, gamma=2.0):
    # Literal translation of the PyTorch module (two-log BCE + exp).
    p = inputs.astype(jnp.float32)
    t = targets.astype(jnp.float32)
    bce = -(t * jnp.maximum(jnp.log(p), -100.0)
            + (1.0 - t) * jnp.maximum(jnp.log(1.0 - p), -100.0))
    pt = jnp.exp(-bce)
    alpha_t = jnp.where(t == 1.0, alpha, 1.0 - alpha)
    return jnp.mean(alpha_t * (1.0 - pt) ** gamma * bce)


if __name__ == "__main__":
    key = jax.random.PRNGKey(0)
    k1, k2 = jax.random.split(key)

    # NCHW conv-style prediction map of probabilities in (0, 1).
    x = jax.nn.sigmoid(jax.random.normal(k1, (2, 4, 16, 16), jnp.float32))
    targets = (jax.random.uniform(k2, (2, 4, 16, 16)) > 0.5).astype(jnp.float32)

    loss = weighted_focal_loss(x, targets, alpha=0.25, gamma=2.0,
                               reduction="mean")
    loss = jax.block_until_ready(loss)

    ref = _reference(x, targets)
    assert jnp.allclose(loss, ref, rtol=1e-5, atol=1e-6), (loss, ref)
    print("KERNEL_OK")
</pallas_src>

<mosaic_0001>
module attributes {stable_mosaic.version = 11 : i64} {
  func.func @_focal_partial_kernel(%arg0: i32, %arg1: memref<2x8x128xf32, #tpu.memory_space<vmem>>, %arg2: memref<2x8x128xf32, #tpu.memory_space<vmem>>, %arg3: memref<1x8x128xf32, #tpu.memory_space<vmem>>) attributes {dimension_semantics = [#tpu.dimension_semantics<parallel>], iteration_bounds = array<i64: 1>, scalar_prefetch = 0 : i64, scratch_operands = 0 : i64, tpu.core_type = #tpu.core_type<tc>, window_params = [{transform_indices = @transform_0, window_bounds = array<i64: 2, 8, 128>}, {transform_indices = @transform_1, window_bounds = array<i64: 2, 8, 128>}, {transform_indices = @transform_2, window_bounds = array<i64: 1, 8, 128>}]} {
    %c0 = arith.constant 0 : index
    %c0_0 = arith.constant 0 : index
    %c0_1 = arith.constant 0 : index
    %0 = vector.load %arg1[%c0, %c0_0, %c0_1] : memref<2x8x128xf32, #tpu.memory_space<vmem>>, vector<2x8x128xf32>
    %c0_2 = arith.constant 0 : index
    %c0_3 = arith.constant 0 : index
    %c0_4 = arith.constant 0 : index
    %1 = vector.load %arg2[%c0_2, %c0_3, %c0_4] : memref<2x8x128xf32, #tpu.memory_space<vmem>>, vector<2x8x128xf32>
    %cst = arith.constant 1.000000e+00 : f32
    %2 = vector.broadcast %cst : f32 to vector<2x8x128xf32>
    %3 = arith.cmpf oeq, %1, %2 : vector<2x8x128xf32>
    %cst_5 = arith.constant 1.000000e+00 : f32
    %4 = vector.broadcast %cst_5 : f32 to vector<2x8x128xf32>
    %5 = arith.subf %4, %0 : vector<2x8x128xf32>
    %6 = arith.select %3, %0, %5 : vector<2x8x128xi1>, vector<2x8x128xf32>
    %7 = math.log %6 : vector<2x8x128xf32>
    %cst_6 = arith.constant -1.000000e+02 : f32
    %8 = vector.broadcast %cst_6 : f32 to vector<2x8x128xf32>
    %9 = arith.maximumf %7, %8 : vector<2x8x128xf32>
    %cst_7 = arith.constant 0.000000e+00 : f32
    %10 = vector.broadcast %cst_7 : f32 to vector<2x8x128xf32>
    %11 = arith.subf %10, %9 : vector<2x8x128xf32>
    %cst_8 = arith.constant 2.500000e-01 : f32
    %cst_9 = arith.constant 7.500000e-01 : f32
    %12 = vector.broadcast %cst_8 : f32 to vector<2x8x128xf32>
    %13 = vector.broadcast %cst_9 : f32 to vector<2x8x128xf32>
    %14 = arith.select %3, %12, %13 : vector<2x8x128xi1>, vector<2x8x128xf32>
    %cst_10 = arith.constant 1.000000e+00 : f32
    %15 = vector.broadcast %cst_10 : f32 to vector<2x8x128xf32>
    %16 = arith.subf %15, %6 : vector<2x8x128xf32>
    %17 = arith.mulf %16, %16 : vector<2x8x128xf32>
    %18 = arith.mulf %14, %17 : vector<2x8x128xf32>
    %19 = arith.mulf %18, %11 : vector<2x8x128xf32>
    %cst_11 = arith.constant dense<0.000000e+00> : vector<8x128xf32>
    %20 = vector.multi_reduction <add>, %19, %cst_11 [0] : vector<2x8x128xf32> to vector<8x128xf32>
    %21 = vector.shape_cast %20 : vector<8x128xf32> to vector<1x8x128xf32>
    %c0_12 = arith.constant 0 : index
    %c0_13 = arith.constant 0 : index
    %c0_14 = arith.constant 0 : index
    %22 = vector.load %arg3[%c0_12, %c0_13, %c0_14] : memref<1x8x128xf32, #tpu.memory_space<vmem>>, vector<1x8x128xf32>
    tpu.vector_store %arg3[%c0_12, %c0_13, %c0_14], %21 {strides = array<i32>} : memref<1x8x128xf32, #tpu.memory_space<vmem>>, vector<1x8x128xf32>,
    return
  }
  func.func @transform_0(%arg0: i32) -> (i32, i32, i32) {
    %c0_i32 = arith.constant 0 : i32
    %c0_i32_0 = arith.constant 0 : i32
    %c0_i32_1 = arith.constant 0 : i32
    return %arg0, %c0_i32, %c0_i32_0 : i32, i32, i32
  }
  func.func @transform_1(%arg0: i32) -> (i32, i32, i32) {
    %c0_i32 = arith.constant 0 : i32
    %c0_i32_0 = arith.constant 0 : i32
    %c0_i32_1 = arith.constant 0 : i32
    return %arg0, %c0_i32, %c0_i32_0 : i32, i32, i32
  }
  func.func @transform_2(%arg0: i32) -> (i32, i32, i32) {
    %c0_i32 = arith.constant 0 : i32
    %c0_i32_0 = arith.constant 0 : i32
    %c0_i32_1 = arith.constant 0 : i32
    return %arg0, %c0_i32, %c0_i32_0 : i32, i32, i32
  }
}

</mosaic_0001>

<bundles_post_ra>
// kernel: tpu_custom_call.1
= control target key start
LH: loop header
LB: loop body
LE: loop exit
PB: predicated region body
PF: predicated region fallthrough
CT: control target
= control target key end

     0   :  { %7 = vsyncpa [#allocation3], 0  ;;  %s192_s0 = inlined_call_operand.hbm [shape: f32[2,8,128], index: 0, kind: input, shape index: {}]   ;;  %s193_s1 = inlined_call_operand.hbm [shape: f32[2,8,128], index: 1, kind: input, shape index: {}]   ;;  %s194_s2 = inlined_call_operand.hbm [shape: f32[1,8,128], index: 2, kind: output, shape index: {}]  }
   0x1   :  { %8 = vsyncpa [#allocation6], 0 }
   0x2   :  { %9 = vsyncpa [#allocation4], 0  ;;  %s162_s9 = smov [#allocation2]  }
   0x3   :  { %s15_s10 = sshll.u32 %s162_s9, 4  ;;  %s16_s10 = int_to_ptr.vmem [resolvable:$true] %s15_s10 }
   0x4   :  { %s104_s11 = scalar_lea.vmem %s16_s10, 256  ;;  %p109_p1 = scmp.lt.s32.totalorder %s16_s10, %s16_s10 }
   0x5   :  { %p105_p0 = scmp.ne.s32.totalorder %s16_s10, %s104_s11  ;;  %p110_p2 = scmp.lt.s32.totalorder %s104_s11, %s104_s11 }
   0x7   :  { %p111_p3 = por %p110_p2, %p109_p1 }
   0x9   :  { %p112_p4 = pnand %p111_p3, %p105_p0 }
   0xb   :  { %115 = shalt.err (!%p112_p4)
}
   0xc   :  { %s163_s12 = smov 128   ;;  %s164_s13 = smov 8  }
   0xd   :  { %21 = dma.hbm_to_vmem [thread:$0]  %s192_s0, 256, %s16_s10, [#allocation3], %s163_s12, %s163_s12, %s164_s13  }
   0xe   :  { %s165_s16 = smov [#allocation5]  }
   0xf   :  { %s27_s17 = sshll.u32 %s165_s16, 4  ;;  %s28_s17 = int_to_ptr.vmem [resolvable:$true] %s27_s17 }
  0x10   :  { %s124_s18 = scalar_lea.vmem %s28_s17, 256  ;;  %p129_p6 = scmp.lt.s32.totalorder %s28_s17, %s28_s17 }
  0x11   :  { %p125_p5 = scmp.ne.s32.totalorder %s28_s17, %s124_s18  ;;  %p130_p7 = scmp.lt.s32.totalorder %s124_s18, %s124_s18 }
  0x13   :  { %p131_p8 = por %p130_p7, %p129_p6 }
  0x15   :  { %p132_p9 = pnand %p131_p8, %p125_p5 }
  0x17   :  { %135 = shalt.err (!%p132_p9)
}
  0x18   :  { %33 = dma.hbm_to_vmem [thread:$0]  %s193_s1, 256, %s28_s17, [#allocation6], %s163_s12, %s163_s12, %s164_s13  }
  0x19   :  { %156 = dma.done.wait [#allocation3], 256  }
  0x1a   :  { %157 = vsyncadd [#allocation3], 4294967040 }
  0x1b   :  { %158 = dma.done.wait [#allocation6], 256  }
  0x1c   :  { %159 = vsyncadd [#allocation6], 4294967040  ;;  %v40_v0 = vld [vmem:[#allocation2] sm:$0xff]  ;;  %v41_v1 = vld [vmem:[#allocation2 + $0x8] sm:$0xff]  ;;  %v166_v12 = vmov 0.75   ;;  %s167_s0 = smov [#allocation7]  }
  0x1d   :  { %v42_v2 = vld [vmem:[#allocation5] sm:$0xff]  ;;  %v43_v3 = vld [vmem:[#allocation5 + $0x8] sm:$0xff]  ;;  %v46_v4 = vsub.f32 1.0, %v40_v0  ;;  %v47_v5 = vsub.f32 1.0, %v41_v1  ;;  %s76_s1 = sshll.u32 %s167_s0, 4  ;;  %s77_s1 = int_to_ptr.vmem [resolvable:$true] %s76_s1 }
  0x1e   :  { %vm44_vm0 = vcmp.eq.f32.partialorder %v42_v2, 1.0  ;;  %vm45_vm1 = vcmp.eq.f32.partialorder %v43_v3, 1.0  ;;  %s136_s21 = scalar_lea.vmem %s77_s1, 128  ;;  %p141_p11 = scmp.lt.s32.totalorder %s77_s1, %s77_s1 }
  0x1f   :  { %v48_v6 = vsel %vm44_vm0, %v40_v0, %v46_v4  ;;  %v49_v7 = vsel %vm45_vm1, %v41_v1, %v47_v5  ;;  %v58_v13 = vsel %vm44_vm0, 0.25, %v166_v12  ;;  %v59_v17 = vsel %vm45_vm1, 0.25, %v166_v12  ;;  %p137_p10 = scmp.ne.s32.totalorder %s77_s1, %s136_s21  ;;  %p142_p12 = scmp.lt.s32.totalorder %s136_s21, %s136_s21 }
  0x20   :  { %92 = vlog2.f32 %v48_v6  ;;  %v60_v8 = vsub.f32 1.0, %v48_v6  ;;  %v61_v9 = vsub.f32 1.0, %v49_v7 }
  0x21   :  { %94 = vlog2.f32 %v49_v7  ;;  %p143_p13 = por %p142_p12, %p141_p11 }
  0x22   :  { %v62_v10 = vmul.f32 %v60_v8, %v60_v8  ;;  %v63_v14 = vmul.f32 %v61_v9, %v61_v9 }
  0x23   :  { %p144_p0 = pnand %p143_p13, %p137_p10 }
  0x24   :  { %v64_v20 = vmul.f32 %v62_v10, %v58_v13  ;;  %v65_v22 = vmul.f32 %v63_v14, %v59_v17 }
  0x2d   :  { %v93_v11 = vpop.eup %92 }
  0x2e   :  { %v95_v15 = vpop.eup %94  ;;  %v51_v16 = vmul.f32 0.6931472, %v93_v11 }
  0x2f   :  { %v53_v18 = vmul.f32 0.6931472, %v95_v15 }
  0x30   :  { %v54_v19 = vmax.f32 %v51_v16, -100.0 }
  0x31   :  { %v55_v21 = vmax.f32 %v53_v18, -100.0 }
  0x32   :  { %v56_v23 = vsub.f32 0.0, %v54_v19 }
  0x33   :  { %v57_v24 = vsub.f32 0.0, %v55_v21 }
  0x34   :  { %v66_v25 = vmul.f32 %v64_v20, %v56_v23 }
  0x35   :  { %v67_v26 = vmul.f32 %v65_v22, %v57_v24 }
  0x37   :  { %v68_v27 = vadd.f32 %v67_v26, %v66_v25 }
  0x39   :  { %69 = vst [vmem:[#allocation7] sm:$0xff] %v68_v27 }
  0x3a   :  { %147 = shalt.err (!%p144_p0)
}
  0x3b   :  { %79 = dma.vmem_to_hbm [thread:$0]  %s77_s1, 128, %s194_s2, [#allocation4]  }
  0x3c   :  { %160 = dma.done.wait [#allocation4], 128  }
  0x3d   :  { %161 = vsyncadd [#allocation4], 4294967168 }
  0x3e   :  { %83 = vsyncpa [#allocation3], 1 }
  0x3f   :  { %84 = vsyncpa [#allocation6], 1 }
  0x40   :  { %85 = vsyncpa [#allocation4], 1 }

</bundles_post_ra>
